<compile_context>
chip_gen: v7x
topology: tpu7x:2x2x1
jax: 0.10.0
libtpu: 0.0.40
codegen_flags: <defaults>
</compile_context>

<pallas_src>
import functools
import math

import jax
import jax.numpy as jnp
from jax import lax
from jax.experimental import pallas as pl
from jax.experimental.pallas import tpu as pltpu


@functools.lru_cache(maxsize=None)
def _vmem_limit_bytes():
    """Generation-aware VMEM budget.

    ~75% of physical per-core VMEM, capped at 112 MiB:
      v5e/v6e (128 MiB) -> 96 MiB, v7x (64 MiB) -> 48 MiB.
    Falls back to a conservative 48 MiB if the hardware query is unavailable.
    """
    cap = None
    try:
        info = pltpu.get_tpu_info()
        for attr in ("vmem_capacity_bytes", "vmem_size_bytes", "vmem_bytes"):
            cap = getattr(info, attr, None)
            if cap:
                break
    except Exception:
        cap = None
    if not cap:
        return 48 * 1024 * 1024
    return min(int(cap) * 3 // 4, 112 * 1024 * 1024)


def _pick_tile(n, preferred, multiple=8):
    """Largest divisor of n that is <= preferred and a multiple of `multiple`
    (or n itself — a full-extent block is always layout-legal)."""
    for t in range(min(preferred, n), 0, -1):
        if n % t == 0 and (t % multiple == 0 or t == n):
            return t
    return n


def _recip(x):
    # EUP approximate reciprocal + one Newton-Raphson step (~f32 accuracy);
    # keeps the softmax denominator off the VPU divide path.
    r = pl.reciprocal(x, approx=True)
    return r * (2.0 - x * r)


# ----------------------------------------------------------------------------
# Row-tiled, K-reduced dense layer:  y = x @ W^T + b   (W passed pre-transposed,
# stored bf16; f32 accumulation in VMEM scratch)
# ----------------------------------------------------------------------------
def _linear_kernel(x_ref, w_ref, b_ref, o_ref, acc_ref):
    kk = pl.program_id(1)

    @pl.when(kk == 0)
    def _init():
        acc_ref[...] = jnp.zeros_like(acc_ref)

    # bf16 MXU operands, f32 accumulate.
    acc_ref[...] += jnp.dot(x_ref[...].astype(jnp.bfloat16), w_ref[...],
                            preferred_element_type=jnp.float32)

    @pl.when(kk == pl.num_programs(1) - 1)
    def _finalize():
        o_ref[...] = (acc_ref[...] + b_ref[...]).astype(o_ref.dtype)


def linear(x, w_t_bf16, b, *, out_dtype=None, tm_pref=512, tk_pref=512):
    """x: (N, d_in), w_t_bf16: (d_in, d_out) bf16, b: (d_out,) -> (N, d_out)."""
    n, d_in = x.shape
    d_out = w_t_bf16.shape[1]
    out_dtype = out_dtype or x.dtype
    tm = _pick_tile(n, tm_pref, 8)
    tk = _pick_tile(d_in, tk_pref, 128)
    return pl.pallas_call(
        _linear_kernel,
        grid=(n // tm, d_in // tk),
        out_shape=jax.ShapeDtypeStruct((n, d_out), out_dtype),
        in_specs=[
            pl.BlockSpec((tm, tk), lambda i, k: (i, k)),
            pl.BlockSpec((tk, d_out), lambda i, k: (k, 0)),
            pl.BlockSpec((1, d_out), lambda i, k: (0, 0)),
        ],
        out_specs=pl.BlockSpec((tm, d_out), lambda i, k: (i, 0)),
        scratch_shapes=[pltpu.VMEM((tm, d_out), jnp.float32)],
        compiler_params=pltpu.CompilerParams(
            dimension_semantics=("parallel", "arbitrary"),
            vmem_limit_bytes=_vmem_limit_bytes(),
        ),
    )(x, w_t_bf16, b.reshape(1, d_out))


# ----------------------------------------------------------------------------
# Fused Q/K/V projection: one pass over x, three HEAD-MAJOR (B, h, T, d_k)
# bf16 outputs; d_in reduction grid axis + f32 accumulator; 1/sqrt(d_k) is
# already folded into the Q weight columns / bias.
# ----------------------------------------------------------------------------
def _qkv_kernel(x_ref, w_ref, b_ref, q_ref, k_ref, v_ref, acc_ref,
                *, h, d_k, n_units):
    kk = pl.program_id(2)

    @pl.when(kk == 0)
    def _init():
        acc_ref[...] = jnp.zeros_like(acc_ref)

    acc_ref[...] += jnp.dot(x_ref[0].astype(jnp.bfloat16), w_ref[...],
                            preferred_element_type=jnp.float32)

    @pl.when(kk == pl.num_programs(2) - 1)
    def _finalize():
        y = acc_ref[...] + b_ref[...]                       # (tt, 3*n_units) f32
        # Static lane slices + full (tt, d_k) block stores -> head-major output
        # without any wrapper transpose of Q/K/V.
        for head in range(h):
            c = head * d_k
            q_ref[0, head] = y[:, c:c + d_k].astype(q_ref.dtype)
            k_ref[0, head] = y[:, n_units + c:n_units + c + d_k].astype(k_ref.dtype)
            v_ref[0, head] = y[:, 2 * n_units + c:2 * n_units + c + d_k].astype(v_ref.dtype)


def qkv_projection(x3, w_qkv_bf16, b_qkv, h, *, tt_pref=512, tk_pref=512):
    """x3: (B, T, n_units) -> q, k, v each (B, h, T, d_k) bf16."""
    B, T, n_units = x3.shape
    d_k = n_units // h
    d3 = 3 * n_units
    tt = _pick_tile(T, tt_pref, 8)
    tk = _pick_tile(n_units, tk_pref, 128)
    kernel = functools.partial(_qkv_kernel, h=h, d_k=d_k, n_units=n_units)
    out_sds = jax.ShapeDtypeStruct((B, h, T, d_k), jnp.bfloat16)
    out_spec = pl.BlockSpec((1, h, tt, d_k), lambda b, t, k: (b, 0, t, 0))
    return pl.pallas_call(
        kernel,
        grid=(B, T // tt, n_units // tk),
        out_shape=(out_sds, out_sds, out_sds),
        in_specs=[
            pl.BlockSpec((1, tt, tk), lambda b, t, k: (b, t, k)),
            pl.BlockSpec((tk, d3), lambda b, t, k: (k, 0)),
            pl.BlockSpec((1, d3), lambda b, t, k: (0, 0)),
        ],
        out_specs=(out_spec, out_spec, out_spec),
        scratch_shapes=[pltpu.VMEM((tt, d3), jnp.float32)],
        compiler_params=pltpu.CompilerParams(
            dimension_semantics=("parallel", "parallel", "arbitrary"),
            vmem_limit_bytes=_vmem_limit_bytes(),
        ),
    )(x3, w_qkv_bf16, b_qkv.reshape(1, d3))


# ----------------------------------------------------------------------------
# Flash attention: grid = (B, q-tiles, heads, kv-tiles); online softmax with
# per-(q-tile, head) scratch.  Q is already scaled by 1/sqrt(d_k).
# q, k, v: (B, h, T, d_k) bf16 -> ctx: (B, h, T, d_k) bf16
# ----------------------------------------------------------------------------
def _flash_attn_kernel(q_ref, k_ref, v_ref, o_ref, m_ref, l_ref, acc_ref):
    kv = pl.program_id(3)

    @pl.when(kv == 0)
    def _init():
        m_ref[...] = jnp.full(m_ref.shape, -jnp.inf, m_ref.dtype)
        l_ref[...] = jnp.zeros_like(l_ref)
        acc_ref[...] = jnp.zeros_like(acc_ref)

    q = q_ref[0, 0]                          # (tq, d_k) bf16, pre-scaled
    k = k_ref[0, 0]                          # (tk, d_k) bf16
    v = v_ref[0, 0]                          # (tk, d_k) bf16

    # scores: contract last dims -- no explicit transpose of the K tile.
    s = lax.dot_general(q, k, (((1,), (1,)), ((), ())),
                        preferred_element_type=jnp.float32)        # (tq, tk) f32

    m_prev = m_ref[...]
    m_new = jnp.maximum(m_prev, jnp.max(s, axis=-1, keepdims=True))
    alpha = jnp.exp(m_prev - m_new)
    p = jnp.exp(s - m_new)                                          # (tq, tk) f32
    pv = lax.dot_general(p.astype(v.dtype), v, (((1,), (0,)), ((), ())),
                         preferred_element_type=jnp.float32)        # (tq, d_k)

    m_ref[...] = m_new
    l_ref[...] = alpha * l_ref[...] + jnp.sum(p, axis=-1, keepdims=True)
    acc_ref[...] = alpha * acc_ref[...] + pv

    @pl.when(kv == pl.num_programs(3) - 1)
    def _finalize():
        # TODO(synk): training-mode dropout on the attention probs omitted
        # (eval semantics: identity).
        o_ref[0, 0] = (acc_ref[...] * _recip(l_ref[...])).astype(o_ref.dtype)


def flash_attention(q, k, v, *, tq_pref=256, tk_pref=512):
    B, h, T, d_k = q.shape
    tq = _pick_tile(T, tq_pref, 8)
    tk = _pick_tile(T, tk_pref, 8)
    return pl.pallas_call(
        _flash_attn_kernel,
        grid=(B, T // tq, h, T // tk),
        out_shape=jax.ShapeDtypeStruct((B, h, T, d_k), jnp.bfloat16),
        in_specs=[
            pl.BlockSpec((1, 1, tq, d_k), lambda b, qi, hh, kv: (b, hh, qi, 0)),
            pl.BlockSpec((1, 1, tk, d_k), lambda b, qi, hh, kv: (b, hh, kv, 0)),
            pl.BlockSpec((1, 1, tk, d_k), lambda b, qi, hh, kv: (b, hh, kv, 0)),
        ],
        out_specs=pl.BlockSpec((1, 1, tq, d_k), lambda b, qi, hh, kv: (b, hh, qi, 0)),
        scratch_shapes=[
            pltpu.VMEM((tq, 1), jnp.float32),      # running max  m
            pltpu.VMEM((tq, 1), jnp.float32),      # running sum  l
            pltpu.VMEM((tq, d_k), jnp.float32),    # unnormalized context
        ],
        compiler_params=pltpu.CompilerParams(
            dimension_semantics=("parallel", "parallel", "parallel", "arbitrary"),
            vmem_limit_bytes=_vmem_limit_bytes(),
        ),
    )(q, k, v)


# ----------------------------------------------------------------------------
# Debug path: also materializes att = softmax(scores) (B, h, T, T), tiled per
# (batch, head, q-tile) so VMEM never holds an (h, T, T) block.
# ----------------------------------------------------------------------------
def _attn_probs_kernel(q_ref, k_ref, v_ref, o_ref, att_ref):
    q = q_ref[0, 0]                          # (tq, d_k) bf16, pre-scaled
    k = k_ref[0, 0]                          # (T,  d_k) bf16
    v = v_ref[0, 0]                          # (T,  d_k) bf16
    s = lax.dot_general(q, k, (((1,), (1,)), ((), ())),
                        preferred_element_type=jnp.float32)        # (tq, T)
    e = jnp.exp(s - jnp.max(s, axis=-1, keepdims=True))
    p = e * _recip(jnp.sum(e, axis=-1, keepdims=True))             # softmax dim=3
    att_ref[0, 0] = p
    # TODO(synk): training-mode dropout on p omitted (eval semantics).
    o_ref[0, 0] = lax.dot_general(p.astype(v.dtype), v, (((1,), (0,)), ((), ())),
                                  preferred_element_type=jnp.float32
                                  ).astype(o_ref.dtype)


def attention_with_probs(q, k, v, *, tq_pref=256):
    B, h, T, d_k = q.shape
    tq = _pick_tile(T, tq_pref, 8)
    return pl.pallas_call(
        _attn_probs_kernel,
        grid=(B, h, T // tq),
        out_shape=(
            jax.ShapeDtypeStruct((B, h, T, d_k), jnp.bfloat16),
            jax.ShapeDtypeStruct((B, h, T, T), jnp.float32),
        ),
        in_specs=[
            pl.BlockSpec((1, 1, tq, d_k), lambda b, hh, qi: (b, hh, qi, 0)),
            pl.BlockSpec((1, 1, T, d_k), lambda b, hh, qi: (b, hh, 0, 0)),
            pl.BlockSpec((1, 1, T, d_k), lambda b, hh, qi: (b, hh, 0, 0)),
        ],
        out_specs=(
            pl.BlockSpec((1, 1, tq, d_k), lambda b, hh, qi: (b, hh, qi, 0)),
            pl.BlockSpec((1, 1, tq, T), lambda b, hh, qi: (b, hh, qi, 0)),
        ),
        compiler_params=pltpu.CompilerParams(
            dimension_semantics=("parallel", "parallel", "parallel"),
            vmem_limit_bytes=_vmem_limit_bytes(),
        ),
    )(q, k, v)


# ----------------------------------------------------------------------------
# Module wrapper
# ----------------------------------------------------------------------------
class MultiHeadSelfAttentionPallas:
    def __init__(self, n_units, h=8, dropout_rate=0.1, key=jax.random.PRNGKey(0)):
        assert n_units % h == 0
        self.n_units = n_units
        self.h = h
        self.d_k = n_units // h
        self.dropout_rate = dropout_rate   # TODO(synk): dropout is identity (eval mode)
        self.att = None

        bound = 1.0 / math.sqrt(n_units)   # nn.Linear default init bound
        keys = jax.random.split(key, 8)

        def mk_w(k):
            # PyTorch weight is (out, in); store transposed (in, out) for x @ W^T
            return jax.random.uniform(k, (n_units, n_units), jnp.float32, -bound, bound)

        def mk_b(k):
            return jax.random.uniform(k, (n_units,), jnp.float32, -bound, bound)

        # f32 masters (used by the pure-JAX reference)
        self.wq_t, self.bq = mk_w(keys[0]), mk_b(keys[1])
        self.wk_t, self.bk = mk_w(keys[2]), mk_b(keys[3])
        self.wv_t, self.bv = mk_w(keys[4]), mk_b(keys[5])
        self.wo_t, self.bo = mk_w(keys[6]), mk_b(keys[7])

        # Fused QKV weight: x is read from HBM once.  The 1/sqrt(d_k) softmax
        # scale is folded into the Q columns/bias so the attention kernels
        # never multiply by it.  Weights stored bf16 (MXU-native, half the
        # VMEM residency); biases stay f32 for the accumulate.
        scale = 1.0 / math.sqrt(self.d_k)
        self.w_qkv_bf16 = jnp.concatenate(
            [self.wq_t * scale, self.wk_t, self.wv_t], axis=1).astype(jnp.bfloat16)
        self.b_qkv = jnp.concatenate([self.bq * scale, self.bk, self.bv])
        self.wo_bf16 = self.wo_t.astype(jnp.bfloat16)

    def __call__(self, x, batch_size, store_att=False):
        # x: (B*T, n_units)
        B, h, n_units = batch_size, self.h, self.n_units
        N = x.shape[0]
        assert N % B == 0
        T = N // B

        x3 = x.reshape(B, T, n_units)                                # free view
        q, k, v = qkv_projection(x3, self.w_qkv_bf16, self.b_qkv, h)  # (B,h,T,d_k) bf16

        if store_att:
            ctx, att = attention_with_probs(q, k, v)
            self.att = att                       # == softmax(scores, dim=3)
        else:
            ctx = flash_attention(q, k, v)       # (B, h, T, d_k) bf16
            self.att = None                      # not materialized on the fast path

        # Layout plumbing only (bf16, half an f32 pass): head-major -> lane-dense
        # (N, n_units) slab so the output projection contracts the full n_units.
        ctx_2d = jnp.transpose(ctx, (0, 2, 1, 3)).reshape(N, n_units)
        return linear(ctx_2d, self.wo_bf16, self.bo, out_dtype=x.dtype)


# ----------------------------------------------------------------------------
# Pure-JAX f32 reference (correctness check)
# ----------------------------------------------------------------------------
def reference(mod, x, batch_size):
    B, h, d_k = batch_size, mod.h, mod.d_k
    q = (x @ mod.wq_t + mod.bq).reshape(B, -1, h, d_k)
    k = (x @ mod.wk_t + mod.bk).reshape(B, -1, h, d_k)
    v = (x @ mod.wv_t + mod.bv).reshape(B, -1, h, d_k)
    qh = jnp.transpose(q, (0, 2, 1, 3))
    kh = jnp.transpose(k, (0, 2, 1, 3))
    vh = jnp.transpose(v, (0, 2, 1, 3))
    scores = jnp.einsum("bhqd,bhkd->bhqk", qh, kh) / math.sqrt(d_k)
    att = jax.nn.softmax(scores, axis=3)
    ctx = jnp.einsum("bhqk,bhkd->bhqd", att, vh)
    out = jnp.transpose(ctx, (0, 2, 1, 3)).reshape(-1, h * d_k)
    return out @ mod.wo_t + mod.bo, att


if __name__ == "__main__":
    n_units, h = 32, 8
    batch_size, seq_len = 2, 8

    key = jax.random.PRNGKey(0)
    k_x, k_params = jax.random.split(key)
    x = jax.random.normal(k_x, (batch_size * seq_len, n_units), jnp.float32)

    mod = MultiHeadSelfAttentionPallas(n_units, h=h, key=k_params)

    # Fast path (flash attention, att not materialized)
    out = mod(x, batch_size)
    out = jax.block_until_ready(out)

    ref_out, ref_att = reference(mod, x, batch_size)
    assert out.shape == (batch_size * seq_len, n_units)
    # bf16 MXU operands (f32 accumulation) -> relaxed tolerance vs f32 reference
    assert jnp.allclose(out, ref_out, atol=2e-2, rtol=2e-2), "flash path mismatch"

    # Debug path (also produces attention probabilities)
    out2 = mod(x, batch_size, store_att=True)
    out2 = jax.block_until_ready(out2)
    assert jnp.allclose(out2, ref_out, atol=2e-2, rtol=2e-2), "att path mismatch"
    assert mod.att.shape == (batch_size, h, seq_len, seq_len)
    assert jnp.allclose(mod.att, ref_att, atol=1e-2, rtol=1e-2), "att probs mismatch"

    print("KERNEL_OK")
</pallas_src>

<mosaic_0001>
module attributes {stable_mosaic.version = 11 : i64} {
  func.func @_qkv_kernel(%arg0: i32, %arg1: i32, %arg2: i32, %arg3: memref<1x8x32xf32, #tpu.memory_space<vmem>>, %arg4: memref<32x96xbf16, #tpu.memory_space<vmem>>, %arg5: memref<1x96xf32, #tpu.memory_space<vmem>>, %arg6: memref<1x8x8x4xbf16, #tpu.memory_space<vmem>>, %arg7: memref<1x8x8x4xbf16, #tpu.memory_space<vmem>>, %arg8: memref<1x8x8x4xbf16, #tpu.memory_space<vmem>>, %arg9: memref<8x96xf32, #tpu.memory_space<vmem>>) attributes {dimension_semantics = [#tpu.dimension_semantics<parallel>, #tpu.dimension_semantics<parallel>, #tpu.dimension_semantics<arbitrary>], iteration_bounds = array<i64: 2, 1, 1>, scalar_prefetch = 0 : i64, scratch_operands = 1 : i64, tpu.core_type = #tpu.core_type<tc>, window_params = [{transform_indices = @transform_0, window_bounds = array<i64: 1, 8, 32>}, {transform_indices = @transform_1, window_bounds = array<i64: 32, 96>}, {pipeline_mode = #tpu.pipeline_mode<synchronous>, transform_indices = @transform_2, window_bounds = array<i64: 1, 96>}, {transform_indices = @transform_3, window_bounds = array<i64: 1, 8, 8, 4>}, {transform_indices = @transform_4, window_bounds = array<i64: 1, 8, 8, 4>}, {transform_indices = @transform_5, window_bounds = array<i64: 1, 8, 8, 4>}]} {
    %c0_i32 = arith.constant 0 : i32
    %0 = arith.cmpi eq, %arg2, %c0_i32 : i32
    %1 = arith.extui %0 : i1 to i32
    %c0_i32_0 = arith.constant 0 : i32
    %2 = arith.cmpi ne, %1, %c0_i32_0 : i32
    scf.if %2 {
      %cst_11 = arith.constant 0.000000e+00 : f32
      %14 = vector.broadcast %cst_11 : f32 to vector<8x96xf32>
      %c0_12 = arith.constant 0 : index
      %c0_13 = arith.constant 0 : index
      %15 = vector.load %arg9[%c0_12, %c0_13] : memref<8x96xf32, #tpu.memory_space<vmem>>, vector<8x96xf32>
      tpu.vector_store %arg9[%c0_12, %c0_13], %14 {strides = array<i32>} : memref<8x96xf32, #tpu.memory_space<vmem>>, vector<8x96xf32>,
    } else {
    }
    %c0 = arith.constant 0 : index
    %c0_1 = arith.constant 0 : index
    %3 = vector.load %arg9[%c0, %c0_1] : memref<8x96xf32, #tpu.memory_space<vmem>>, vector<8x96xf32>
    %c0_2 = arith.constant 0 : index
    %c0_3 = arith.constant 0 : index
    %c0_4 = arith.constant 0 : index
    %4 = vector.load %arg3[%c0_2, %c0_3, %c0_4] : memref<1x8x32xf32, #tpu.memory_space<vmem>>, vector<1x8x32xf32>
    %5 = vector.shape_cast %4 : vector<1x8x32xf32> to vector<8x32xf32>
    %6 = arith.truncf %5 : vector<8x32xf32> to vector<8x32xbf16>
    %c0_5 = arith.constant 0 : index
    %c0_6 = arith.constant 0 : index
    %7 = vector.load %arg4[%c0_5, %c0_6] : memref<32x96xbf16, #tpu.memory_space<vmem>>, vector<32x96xbf16>
    %cst = arith.constant dense<0.000000e+00> : vector<8x96xf32>
    %8 = tpu.matmul %6, %7, %cst {dimension_numbers = #tpu.dot_dimension_numbers<[1], [0], [0], [1], [0, 0, 1, 1], [], []>} : vector<8x32xbf16>, vector<32x96xbf16>, vector<8x96xf32> -> vector<8x96xf32>
    %9 = arith.addf %3, %8 : vector<8x96xf32>
    %c0_7 = arith.constant 0 : index
    %c0_8 = arith.constant 0 : index
    %10 = vector.load %arg9[%c0_7, %c0_8] : memref<8x96xf32, #tpu.memory_space<vmem>>, vector<8x96xf32>
    tpu.vector_store %arg9[%c0_7, %c0_8], %9 {strides = array<i32>} : memref<8x96xf32, #tpu.memory_space<vmem>>, vector<8x96xf32>,
    %c0_i32_9 = arith.constant 0 : i32
    %11 = arith.cmpi eq, %arg2, %c0_i32_9 : i32
    %12 = arith.extui %11 : i1 to i32
    %c0_i32_10 = arith.constant 0 : i32
    %13 = arith.cmpi ne, %12, %c0_i32_10 : i32
    scf.if %13 {
      %c0_11 = arith.constant 0 : index
      %c0_12 = arith.constant 0 : index
      %14 = vector.load %arg9[%c0_11, %c0_12] : memref<8x96xf32, #tpu.memory_space<vmem>>, vector<8x96xf32>
      %c0_13 = arith.constant 0 : index
      %c0_14 = arith.constant 0 : index
      %15 = vector.load %arg5[%c0_13, %c0_14] : memref<1x96xf32, #tpu.memory_space<vmem>>, vector<1x96xf32>
      %16 = vector.broadcast %15 : vector<1x96xf32> to vector<8x96xf32>
      %17 = arith.addf %14, %16 : vector<8x96xf32>
      %18 = vector.extract_strided_slice %17 {offsets = [0, 0], sizes = [8, 4], strides = [1, 1]} : vector<8x96xf32> to vector<8x4xf32>
      %19 = arith.truncf %18 : vector<8x4xf32> to vector<8x4xbf16>
      %c0_15 = arith.constant 0 : index
      %c0_16 = arith.constant 0 : index
      %c0_17 = arith.constant 0 : index
      %c0_18 = arith.constant 0 : index
      %20 = vector.load %arg6[%c0_15, %c0_16, %c0_17, %c0_18] : memref<1x8x8x4xbf16, #tpu.memory_space<vmem>>, vector<1x1x8x4xbf16>
      %21 = vector.shape_cast %20 : vector<1x1x8x4xbf16> to vector<8x4xbf16>
      %22 = vector.shape_cast %19 : vector<8x4xbf16> to vector<1x1x8x4xbf16>
      tpu.vector_store %arg6[%c0_15, %c0_16, %c0_17, %c0_18], %22 {strides = array<i32>} : memref<1x8x8x4xbf16, #tpu.memory_space<vmem>>, vector<1x1x8x4xbf16>,
      %23 = vector.extract_strided_slice %17 {offsets = [0, 32], sizes = [8, 4], strides = [1, 1]} : vector<8x96xf32> to vector<8x4xf32>
      %24 = arith.truncf %23 : vector<8x4xf32> to vector<8x4xbf16>
      %c0_19 = arith.constant 0 : index
      %c0_20 = arith.constant 0 : index
      %c0_21 = arith.constant 0 : index
      %c0_22 = arith.constant 0 : index
      %25 = vector.load %arg7[%c0_19, %c0_20, %c0_21, %c0_22] : memref<1x8x8x4xbf16, #tpu.memory_space<vmem>>, vector<1x1x8x4xbf16>
      %26 = vector.shape_cast %25 : vector<1x1x8x4xbf16> to vector<8x4xbf16>
      %27 = vector.shape_cast %24 : vector<8x4xbf16> to vector<1x1x8x4xbf16>
      tpu.vector_store %arg7[%c0_19, %c0_20, %c0_21, %c0_22], %27 {strides = array<i32>} : memref<1x8x8x4xbf16, #tpu.memory_space<vmem>>, vector<1x1x8x4xbf16>,
      %28 = vector.extract_strided_slice %17 {offsets = [0, 64], sizes = [8, 4], strides = [1, 1]} : vector<8x96xf32> to vector<8x4xf32>
      %29 = arith.truncf %28 : vector<8x4xf32> to vector<8x4xbf16>
      %c0_23 = arith.constant 0 : index
      %c0_24 = arith.constant 0 : index
      %c0_25 = arith.constant 0 : index
      %c0_26 = arith.constant 0 : index
      %30 = vector.load %arg8[%c0_23, %c0_24, %c0_25, %c0_26] : memref<1x8x8x4xbf16, #tpu.memory_space<vmem>>, vector<1x1x8x4xbf16>
      %31 = vector.shape_cast %30 : vector<1x1x8x4xbf16> to vector<8x4xbf16>
      %32 = vector.shape_cast %29 : vector<8x4xbf16> to vector<1x1x8x4xbf16>
      tpu.vector_store %arg8[%c0_23, %c0_24, %c0_25, %c0_26], %32 {strides = array<i32>} : memref<1x8x8x4xbf16, #tpu.memory_space<vmem>>, vector<1x1x8x4xbf16>,
      %33 = vector.extract_strided_slice %17 {offsets = [0, 4], sizes = [8, 4], strides = [1, 1]} : vector<8x96xf32> to vector<8x4xf32>
      %34 = arith.truncf %33 : vector<8x4xf32> to vector<8x4xbf16>
      %c0_27 = arith.constant 0 : index
      %c1 = arith.constant 1 : index
      %c0_28 = arith.constant 0 : index
      %c0_29 = arith.constant 0 : index
      %35 = vector.load %arg6[%c0_27, %c1, %c0_28, %c0_29] : memref<1x8x8x4xbf16, #tpu.memory_space<vmem>>, vector<1x1x8x4xbf16>
      %36 = vector.shape_cast %35 : vector<1x1x8x4xbf16> to vector<8x4xbf16>
      %37 = vector.shape_cast %34 : vector<8x4xbf16> to vector<1x1x8x4xbf16>
      tpu.vector_store %arg6[%c0_27, %c1, %c0_28, %c0_29], %37 {strides = array<i32>} : memref<1x8x8x4xbf16, #tpu.memory_space<vmem>>, vector<1x1x8x4xbf16>,
      %38 = vector.extract_strided_slice %17 {offsets = [0, 36], sizes = [8, 4], strides = [1, 1]} : vector<8x96xf32> to vector<8x4xf32>
      %39 = arith.truncf %38 : vector<8x4xf32> to vector<8x4xbf16>
      %c0_30 = arith.constant 0 : index
      %c1_31 = arith.constant 1 : index
      %c0_32 = arith.constant 0 : index
      %c0_33 = arith.constant 0 : index
      %40 = vector.load %arg7[%c0_30, %c1_31, %c0_32, %c0_33] : memref<1x8x8x4xbf16, #tpu.memory_space<vmem>>, vector<1x1x8x4xbf16>
      %41 = vector.shape_cast %40 : vector<1x1x8x4xbf16> to vector<8x4xbf16>
      %42 = vector.shape_cast %39 : vector<8x4xbf16> to vector<1x1x8x4xbf16>
      tpu.vector_store %arg7[%c0_30, %c1_31, %c0_32, %c0_33], %42 {strides = array<i32>} : memref<1x8x8x4xbf16, #tpu.memory_space<vmem>>, vector<1x1x8x4xbf16>,
      %43 = vector.extract_strided_slice %17 {offsets = [0, 68], sizes = [8, 4], strides = [1, 1]} : vector<8x96xf32> to vector<8x4xf32>
      %44 = arith.truncf %43 : vector<8x4xf32> to vector<8x4xbf16>
      %c0_34 = arith.constant 0 : index
      %c1_35 = arith.constant 1 : index
      %c0_36 = arith.constant 0 : index
      %c0_37 = arith.constant 0 : index
      %45 = vector.load %arg8[%c0_34, %c1_35, %c0_36, %c0_37] : memref<1x8x8x4xbf16, #tpu.memory_space<vmem>>, vector<1x1x8x4xbf16>
      %46 = vector.shape_cast %45 : vector<1x1x8x4xbf16> to vector<8x4xbf16>
      %47 = vector.shape_cast %44 : vector<8x4xbf16> to vector<1x1x8x4xbf16>
      tpu.vector_store %arg8[%c0_34, %c1_35, %c0_36, %c0_37], %47 {strides = array<i32>} : memref<1x8x8x4xbf16, #tpu.memory_space<vmem>>, vector<1x1x8x4xbf16>,
      %48 = vector.extract_strided_slice %17 {offsets = [0, 8], sizes = [8, 4], strides = [1, 1]} : vector<8x96xf32> to vector<8x4xf32>
      %49 = arith.truncf %48 : vector<8x4xf32> to vector<8x4xbf16>
      %c0_38 = arith.constant 0 : index
      %c2 = arith.constant 2 : index
      %c0_39 = arith.constant 0 : index
      %c0_40 = arith.constant 0 : index
      %50 = vector.load %arg6[%c0_38, %c2, %c0_39, %c0_40] : memref<1x8x8x4xbf16, #tpu.memory_space<vmem>>, vector<1x1x8x4xbf16>
      %51 = vector.shape_cast %50 : vector<1x1x8x4xbf16> to vector<8x4xbf16>
      %52 = vector.shape_cast %49 : vector<8x4xbf16> to vector<1x1x8x4xbf16>
      tpu.vector_store %arg6[%c0_38, %c2, %c0_39, %c0_40], %52 {strides = array<i32>} : memref<1x8x8x4xbf16, #tpu.memory_space<vmem>>, vector<1x1x8x4xbf16>,
      %53 = vector.extract_strided_slice %17 {offsets = [0, 40], sizes = [8, 4], strides = [1, 1]} : vector<8x96xf32> to vector<8x4xf32>
      %54 = arith.truncf %53 : vector<8x4xf32> to vector<8x4xbf16>
      %c0_41 = arith.constant 0 : index
      %c2_42 = arith.constant 2 : index
      %c0_43 = arith.constant 0 : index
      %c0_44 = arith.constant 0 : index
      %55 = vector.load %arg7[%c0_41, %c2_42, %c0_43, %c0_44] : memref<1x8x8x4xbf16, #tpu.memory_space<vmem>>, vector<1x1x8x4xbf16>
      %56 = vector.shape_cast %55 : vector<1x1x8x4xbf16> to vector<8x4xbf16>
      %57 = vector.shape_cast %54 : vector<8x4xbf16> to vector<1x1x8x4xbf16>
      tpu.vector_store %arg7[%c0_41, %c2_42, %c0_43, %c0_44], %57 {strides = array<i32>} : memref<1x8x8x4xbf16, #tpu.memory_space<vmem>>, vector<1x1x8x4xbf16>,
      %58 = vector.extract_strided_slice %17 {offsets = [0, 72], sizes = [8, 4], strides = [1, 1]} : vector<8x96xf32> to vector<8x4xf32>
      %59 = arith.truncf %58 : vector<8x4xf32> to vector<8x4xbf16>
      %c0_45 = arith.constant 0 : index
      %c2_46 = arith.constant 2 : index
      %c0_47 = arith.constant 0 : index
      %c0_48 = arith.constant 0 : index
      %60 = vector.load %arg8[%c0_45, %c2_46, %c0_47, %c0_48] : memref<1x8x8x4xbf16, #tpu.memory_space<vmem>>, vector<1x1x8x4xbf16>
      %61 = vector.shape_cast %60 : vector<1x1x8x4xbf16> to vector<8x4xbf16>
      %62 = vector.shape_cast %59 : vector<8x4xbf16> to vector<1x1x8x4xbf16>
      tpu.vector_store %arg8[%c0_45, %c2_46, %c0_47, %c0_48], %62 {strides = array<i32>} : memref<1x8x8x4xbf16, #tpu.memory_space<vmem>>, vector<1x1x8x4xbf16>,
      %63 = vector.extract_strided_slice %17 {offsets = [0, 12], sizes = [8, 4], strides = [1, 1]} : vector<8x96xf32> to vector<8x4xf32>
      %64 = arith.truncf %63 : vector<8x4xf32> to vector<8x4xbf16>
      %c0_49 = arith.constant 0 : index
      %c3 = arith.constant 3 : index
      %c0_50 = arith.constant 0 : index
      %c0_51 = arith.constant 0 : index
      %65 = vector.load %arg6[%c0_49, %c3, %c0_50, %c0_51] : memref<1x8x8x4xbf16, #tpu.memory_space<vmem>>, vector<1x1x8x4xbf16>
      %66 = vector.shape_cast %65 : vector<1x1x8x4xbf16> to vector<8x4xbf16>
      %67 = vector.shape_cast %64 : vector<8x4xbf16> to vector<1x1x8x4xbf16>
      tpu.vector_store %arg6[%c0_49, %c3, %c0_50, %c0_51], %67 {strides = array<i32>} : memref<1x8x8x4xbf16, #tpu.memory_space<vmem>>, vector<1x1x8x4xbf16>,
      %68 = vector.extract_strided_slice %17 {offsets = [0, 44], sizes = [8, 4], strides = [1, 1]} : vector<8x96xf32> to vector<8x4xf32>
      %69 = arith.truncf %68 : vector<8x4xf32> to vector<8x4xbf16>
      %c0_52 = arith.constant 0 : index
      %c3_53 = arith.constant 3 : index
      %c0_54 = arith.constant 0 : index
      %c0_55 = arith.constant 0 : index
      %70 = vector.load %arg7[%c0_52, %c3_53, %c0_54, %c0_55] : memref<1x8x8x4xbf16, #tpu.memory_space<vmem>>, vector<1x1x8x4xbf16>
      %71 = vector.shape_cast %70 : vector<1x1x8x4xbf16> to vector<8x4xbf16>
      %72 = vector.shape_cast %69 : vector<8x4xbf16> to vector<1x1x8x4xbf16>
      tpu.vector_store %arg7[%c0_52, %c3_53, %c0_54, %c0_55], %72 {strides = array<i32>} : memref<1x8x8x4xbf16, #tpu.memory_space<vmem>>, vector<1x1x8x4xbf16>,
      %73 = vector.extract_strided_slice %17 {offsets = [0, 76], sizes = [8, 4], strides = [1, 1]} : vector<8x96xf32> to vector<8x4xf32>
      %74 = arith.truncf %73 : vector<8x4xf32> to vector<8x4xbf16>
      %c0_56 = arith.constant 0 : index
      %c3_57 = arith.constant 3 : index
      %c0_58 = arith.constant 0 : index
      %c0_59 = arith.constant 0 : index
      %75 = vector.load %arg8[%c0_56, %c3_57, %c0_58, %c0_59] : memref<1x8x8x4xbf16, #tpu.memory_space<vmem>>, vector<1x1x8x4xbf16>
      %76 = vector.shape_cast %75 : vector<1x1x8x4xbf16> to vector<8x4xbf16>
      %77 = vector.shape_cast %74 : vector<8x4xbf16> to vector<1x1x8x4xbf16>
      tpu.vector_store %arg8[%c0_56, %c3_57, %c0_58, %c0_59], %77 {strides = array<i32>} : memref<1x8x8x4xbf16, #tpu.memory_space<vmem>>, vector<1x1x8x4xbf16>,
      %78 = vector.extract_strided_slice %17 {offsets = [0, 16], sizes = [8, 4], strides = [1, 1]} : vector<8x96xf32> to vector<8x4xf32>
      %79 = arith.truncf %78 : vector<8x4xf32> to vector<8x4xbf16>
      %c0_60 = arith.constant 0 : index
      %c4 = arith.constant 4 : index
      %c0_61 = arith.constant 0 : index
      %c0_62 = arith.constant 0 : index
      %80 = vector.load %arg6[%c0_60, %c4, %c0_61, %c0_62] : memref<1x8x8x4xbf16, #tpu.memory_space<vmem>>, vector<1x1x8x4xbf16>
      %81 = vector.shape_cast %80 : vector<1x1x8x4xbf16> to vector<8x4xbf16>
      %82 = vector.shape_cast %79 : vector<8x4xbf16> to vector<1x1x8x4xbf16>
      tpu.vector_store %arg6[%c0_60, %c4, %c0_61, %c0_62], %82 {strides = array<i32>} : memref<1x8x8x4xbf16, #tpu.memory_space<vmem>>, vector<1x1x8x4xbf16>,
      %83 = vector.extract_strided_slice %17 {offsets = [0, 48], sizes = [8, 4], strides = [1, 1]} : vector<8x96xf32> to vector<8x4xf32>
      %84 = arith.truncf %83 : vector<8x4xf32> to vector<8x4xbf16>
      %c0_63 = arith.constant 0 : index
      %c4_64 = arith.constant 4 : index
      %c0_65 = arith.constant 0 : index
      %c0_66 = arith.constant 0 : index
      %85 = vector.load %arg7[%c0_63, %c4_64, %c0_65, %c0_66] : memref<1x8x8x4xbf16, #tpu.memory_space<vmem>>, vector<1x1x8x4xbf16>
      %86 = vector.shape_cast %85 : vector<1x1x8x4xbf16> to vector<8x4xbf16>
      %87 = vector.shape_cast %84 : vector<8x4xbf16> to vector<1x1x8x4xbf16>
      tpu.vector_store %arg7[%c0_63, %c4_64, %c0_65, %c0_66], %87 {strides = array<i32>} : memref<1x8x8x4xbf16, #tpu.memory_space<vmem>>, vector<1x1x8x4xbf16>,
      %88 = vector.extract_strided_slice %17 {offsets = [0, 80], sizes = [8, 4], strides = [1, 1]} : vector<8x96xf32> to vector<8x4xf32>
      %89 = arith.truncf %88 : vector<8x4xf32> to vector<8x4xbf16>
      %c0_67 = arith.constant 0 : index
      %c4_68 = arith.constant 4 : index
      %c0_69 = arith.constant 0 : index
      %c0_70 = arith.constant 0 : index
      %90 = vector.load %arg8[%c0_67, %c4_68, %c0_69, %c0_70] : memref<1x8x8x4xbf16, #tpu.memory_space<vmem>>, vector<1x1x8x4xbf16>
      %91 = vector.shape_cast %90 : vector<1x1x8x4xbf16> to vector<8x4xbf16>
      %92 = vector.shape_cast %89 : vector<8x4xbf16> to vector<1x1x8x4xbf16>
      tpu.vector_store %arg8[%c0_67, %c4_68, %c0_69, %c0_70], %92 {strides = array<i32>} : memref<1x8x8x4xbf16, #tpu.memory_space<vmem>>, vector<1x1x8x4xbf16>,
      %93 = vector.extract_strided_slice %17 {offsets = [0, 20], sizes = [8, 4], strides = [1, 1]} : vector<8x96xf32> to vector<8x4xf32>
      %94 = arith.truncf %93 : vector<8x4xf32> to vector<8x4xbf16>
      %c0_71 = arith.constant 0 : index
      %c5 = arith.constant 5 : index
      %c0_72 = arith.constant 0 : index
      %c0_73 = arith.constant 0 : index
      %95 = vector.load %arg6[%c0_71, %c5, %c0_72, %c0_73] : memref<1x8x8x4xbf16, #tpu.memory_space<vmem>>, vector<1x1x8x4xbf16>
      %96 = vector.shape_cast %95 : vector<1x1x8x4xbf16> to vector<8x4xbf16>
      %97 = vector.shape_cast %94 : vector<8x4xbf16> to vector<1x1x8x4xbf16>
      tpu.vector_store %arg6[%c0_71, %c5, %c0_72, %c0_73], %97 {strides = array<i32>} : memref<1x8x8x4xbf16, #tpu.memory_space<vmem>>, vector<1x1x8x4xbf16>,
      %98 = vector.extract_strided_slice %17 {offsets = [0, 52], sizes = [8, 4], strides = [1, 1]} : vector<8x96xf32> to vector<8x4xf32>
      %99 = arith.truncf %98 : vector<8x4xf32> to vector<8x4xbf16>
      %c0_74 = arith.constant 0 : index
      %c5_75 = arith.constant 5 : index
      %c0_76 = arith.constant 0 : index
      %c0_77 = arith.constant 0 : index
      %100 = vector.load %arg7[%c0_74, %c5_75, %c0_76, %c0_77] : memref<1x8x8x4xbf16, #tpu.memory_space<vmem>>, vector<1x1x8x4xbf16>
      %101 = vector.shape_cast %100 : vector<1x1x8x4xbf16> to vector<8x4xbf16>
      %102 = vector.shape_cast %99 : vector<8x4xbf16> to vector<1x1x8x4xbf16>
      tpu.vector_store %arg7[%c0_74, %c5_75, %c0_76, %c0_77], %102 {strides = array<i32>} : memref<1x8x8x4xbf16, #tpu.memory_space<vmem>>, vector<1x1x8x4xbf16>,
      %103 = vector.extract_strided_slice %17 {offsets = [0, 84], sizes = [8, 4], strides = [1, 1]} : vector<8x96xf32> to vector<8x4xf32>
      %104 = arith.truncf %103 : vector<8x4xf32> to vector<8x4xbf16>
      %c0_78 = arith.constant 0 : index
      %c5_79 = arith.constant 5 : index
      %c0_80 = arith.constant 0 : index
      %c0_81 = arith.constant 0 : index
      %105 = vector.load %arg8[%c0_78, %c5_79, %c0_80, %c0_81] : memref<1x8x8x4xbf16, #tpu.memory_space<vmem>>, vector<1x1x8x4xbf16>
      %106 = vector.shape_cast %105 : vector<1x1x8x4xbf16> to vector<8x4xbf16>
      %107 = vector.shape_cast %104 : vector<8x4xbf16> to vector<1x1x8x4xbf16>
      tpu.vector_store %arg8[%c0_78, %c5_79, %c0_80, %c0_81], %107 {strides = array<i32>} : memref<1x8x8x4xbf16, #tpu.memory_space<vmem>>, vector<1x1x8x4xbf16>,
      %108 = vector.extract_strided_slice %17 {offsets = [0, 24], sizes = [8, 4], strides = [1, 1]} : vector<8x96xf32> to vector<8x4xf32>
      %109 = arith.truncf %108 : vector<8x4xf32> to vector<8x4xbf16>
      %c0_82 = arith.constant 0 : index
      %c6 = arith.constant 6 : index
      %c0_83 = arith.constant 0 : index
      %c0_84 = arith.constant 0 : index
      %110 = vector.load %arg6[%c0_82, %c6, %c0_83, %c0_84] : memref<1x8x8x4xbf16, #tpu.memory_space<vmem>>, vector<1x1x8x4xbf16>
      %111 = vector.shape_cast %110 : vector<1x1x8x4xbf16> to vector<8x4xbf16>
      %112 = vector.shape_cast %109 : vector<8x4xbf16> to vector<1x1x8x4xbf16>
      tpu.vector_store %arg6[%c0_82, %c6, %c0_83, %c0_84], %112 {strides = array<i32>} : memref<1x8x8x4xbf16, #tpu.memory_space<vmem>>, vector<1x1x8x4xbf16>,
      %113 = vector.extract_strided_slice %17 {offsets = [0, 56], sizes = [8, 4], strides = [1, 1]} : vector<8x96xf32> to vector<8x4xf32>
      %114 = arith.truncf %113 : vector<8x4xf32> to vector<8x4xbf16>
      %c0_85 = arith.constant 0 : index
      %c6_86 = arith.constant 6 : index
      %c0_87 = arith.constant 0 : index
      %c0_88 = arith.constant 0 : index
      %115 = vector.load %arg7[%c0_85, %c6_86, %c0_87, %c0_88] : memref<1x8x8x4xbf16, #tpu.memory_space<vmem>>, vector<1x1x8x4xbf16>
      %116 = vector.shape_cast %115 : vector<1x1x8x4xbf16> to vector<8x4xbf16>
      %117 = vector.shape_cast %114 : vector<8x4xbf16> to vector<1x1x8x4xbf16>
      tpu.vector_store %arg7[%c0_85, %c6_86, %c0_87, %c0_88], %117 {strides = array<i32>} : memref<1x8x8x4xbf16, #tpu.memory_space<vmem>>, vector<1x1x8x4xbf16>,
      %118 = vector.extract_strided_slice %17 {offsets = [0, 88], sizes = [8, 4], strides = [1, 1]} : vector<8x96xf32> to vector<8x4xf32>
      %119 = arith.truncf %118 : vector<8x4xf32> to vector<8x4xbf16>
      %c0_89 = arith.constant 0 : index
      %c6_90 = arith.constant 6 : index
      %c0_91 = arith.constant 0 : index
      %c0_92 = arith.constant 0 : index
      %120 = vector.load %arg8[%c0_89, %c6_90, %c0_91, %c0_92] : memref<1x8x8x4xbf16, #tpu.memory_space<vmem>>, vector<1x1x8x4xbf16>
      %121 = vector.shape_cast %120 : vector<1x1x8x4xbf16> to vector<8x4xbf16>
      %122 = vector.shape_cast %119 : vector<8x4xbf16> to vector<1x1x8x4xbf16>
      tpu.vector_store %arg8[%c0_89, %c6_90, %c0_91, %c0_92], %122 {strides = array<i32>} : memref<1x8x8x4xbf16, #tpu.memory_space<vmem>>, vector<1x1x8x4xbf16>,
      %123 = vector.extract_strided_slice %17 {offsets = [0, 28], sizes = [8, 4], strides = [1, 1]} : vector<8x96xf32> to vector<8x4xf32>
      %124 = arith.truncf %123 : vector<8x4xf32> to vector<8x4xbf16>
      %c0_93 = arith.constant 0 : index
      %c7 = arith.constant 7 : index
      %c0_94 = arith.constant 0 : index
      %c0_95 = arith.constant 0 : index
      %125 = vector.load %arg6[%c0_93, %c7, %c0_94, %c0_95] : memref<1x8x8x4xbf16, #tpu.memory_space<vmem>>, vector<1x1x8x4xbf16>
      %126 = vector.shape_cast %125 : vector<1x1x8x4xbf16> to vector<8x4xbf16>
      %127 = vector.shape_cast %124 : vector<8x4xbf16> to vector<1x1x8x4xbf16>
      tpu.vector_store %arg6[%c0_93, %c7, %c0_94, %c0_95], %127 {strides = array<i32>} : memref<1x8x8x4xbf16, #tpu.memory_space<vmem>>, vector<1x1x8x4xbf16>,
      %128 = vector.extract_strided_slice %17 {offsets = [0, 60], sizes = [8, 4], strides = [1, 1]} : vector<8x96xf32> to vector<8x4xf32>
      %129 = arith.truncf %128 : vector<8x4xf32> to vector<8x4xbf16>
      %c0_96 = arith.constant 0 : index
      %c7_97 = arith.constant 7 : index
      %c0_98 = arith.constant 0 : index
      %c0_99 = arith.constant 0 : index
      %130 = vector.load %arg7[%c0_96, %c7_97, %c0_98, %c0_99] : memref<1x8x8x4xbf16, #tpu.memory_space<vmem>>, vector<1x1x8x4xbf16>
      %131 = vector.shape_cast %130 : vector<1x1x8x4xbf16> to vector<8x4xbf16>
      %132 = vector.shape_cast %129 : vector<8x4xbf16> to vector<1x1x8x4xbf16>
      tpu.vector_store %arg7[%c0_96, %c7_97, %c0_98, %c0_99], %132 {strides = array<i32>} : memref<1x8x8x4xbf16, #tpu.memory_space<vmem>>, vector<1x1x8x4xbf16>,
      %133 = vector.extract_strided_slice %17 {offsets = [0, 92], sizes = [8, 4], strides = [1, 1]} : vector<8x96xf32> to vector<8x4xf32>
      %134 = arith.truncf %133 : vector<8x4xf32> to vector<8x4xbf16>
      %c0_100 = arith.constant 0 : index
      %c7_101 = arith.constant 7 : index
      %c0_102 = arith.constant 0 : index
      %c0_103 = arith.constant 0 : index
      %135 = vector.load %arg8[%c0_100, %c7_101, %c0_102, %c0_103] : memref<1x8x8x4xbf16, #tpu.memory_space<vmem>>, vector<1x1x8x4xbf16>
      %136 = vector.shape_cast %135 : vector<1x1x8x4xbf16> to vector<8x4xbf16>
      %137 = vector.shape_cast %134 : vector<8x4xbf16> to vector<1x1x8x4xbf16>
      tpu.vector_store %arg8[%c0_100, %c7_101, %c0_102, %c0_103], %137 {strides = array<i32>} : memref<1x8x8x4xbf16, #tpu.memory_space<vmem>>, vector<1x1x8x4xbf16>,
    } else {
    }
    return
  }
  func.func @transform_0(%arg0: i32, %arg1: i32, %arg2: i32) -> (i32, i32, i32) {
    %c0_i32 = arith.constant 0 : i32
    return %arg0, %arg1, %arg2 : i32, i32, i32
  }
  func.func @transform_1(%arg0: i32, %arg1: i32, %arg2: i32) -> (i32, i32) {
    %c0_i32 = arith.constant 0 : i32
    %c0_i32_0 = arith.constant 0 : i32
    return %arg2, %c0_i32 : i32, i32
  }
  func.func @transform_2(%arg0: i32, %arg1: i32, %arg2: i32) -> (i32, i32) {
    %c0_i32 = arith.constant 0 : i32
    %c0_i32_0 = arith.constant 0 : i32
    %c0_i32_1 = arith.constant 0 : i32
    return %c0_i32, %c0_i32_0 : i32, i32
  }
  func.func @transform_3(%arg0: i32, %arg1: i32, %arg2: i32) -> (i32, i32, i32, i32) {
    %c0_i32 = arith.constant 0 : i32
    %c0_i32_0 = arith.constant 0 : i32
    %c0_i32_1 = arith.constant 0 : i32
    return %arg0, %c0_i32, %arg1, %c0_i32_0 : i32, i32, i32, i32
  }
  func.func @transform_4(%arg0: i32, %arg1: i32, %arg2: i32) -> (i32, i32, i32, i32) {
    %c0_i32 = arith.constant 0 : i32
    %c0_i32_0 = arith.constant 0 : i32
    %c0_i32_1 = arith.constant 0 : i32
    return %arg0, %c0_i32, %arg1, %c0_i32_0 : i32, i32, i32, i32
  }
  func.func @transform_5(%arg0: i32, %arg1: i32, %arg2: i32) -> (i32, i32, i32, i32) {
    %c0_i32 = arith.constant 0 : i32
    %c0_i32_0 = arith.constant 0 : i32
    %c0_i32_1 = arith.constant 0 : i32
    return %arg0, %c0_i32, %arg1, %c0_i32_0 : i32, i32, i32, i32
  }
}

</mosaic_0001>

<bundles_post_ra>
// kernel: tpu_custom_call.1
= control target key start
LH: loop header
LB: loop body
LE: loop exit
PB: predicated region body
PF: predicated region fallthrough
CT: control target
= control target key end

     0   :  { %11 = vsyncpa [#allocation4], 0  ;;  %s1296_s0 = inlined_call_operand.hbm [shape: f32[2,8,32], index: 0, kind: input, shape index: {}]   ;;  %s1297_s1 = inlined_call_operand.hbm [shape: bf16[32,96], index: 1, kind: input, shape index: {}]   ;;  %s1298_s2 = inlined_call_operand.vmem [shape: f32[1,96], index: 2, kind: input, shape index: {}]   ;;  %s1299_s3 = inlined_call_operand.vmem [shape: bf16[2,8,8,4], index: 3, kind: output, shape index: {0}]   ;;  %s1300_s4 = inlined_call_operand.vmem [shape: bf16[2,8,8,4], index: 4, kind: output, shape index: {1}]   ;;  %s1301_s5 = inlined_call_operand.vmem [shape: bf16[2,8,8,4], index: 5, kind: output, shape index: {2}]  }
   0x1   :  { %13 = vsyncpa [#allocation4 + $0x1], 0 }
   0x2   :  { %14 = vsyncpa [#allocation6], 0  ;;  %s1071_s18 = smov 0   ;;  %s1073_s19 = smov 0  }
   0x3   :  { %s1075_s20 = smov 0   ;;  %s1077_s21 = smov 0  }
   0x4   :  { %s1079_s22 = smov 0   ;;  %s1081_s23 = smov 0  }
   0x5 LB: > { %s744_s24 = sadd.s32 4294967295, %s1010_s23   ;;  %p63_p0 = scmp.ne.s32.totalorder %s994_s19, %s990_s18  ;;  %s1010_s23 = sphi %s1081_s23, %s20_s23   ;;  %s1006_s22 = sphi %s1079_s22, %s1318_s22   ;;  %s1002_s21 = sphi %s1077_s21, %s1317_s21   ;;  %s998_s20 = sphi %s1075_s20, %s1316_s20   ;;  %s994_s19 = sphi %s1073_s19, %s1315_s19   ;;  %s990_s18 = sphi %s1071_s18, %s1314_s18  }
   0x6   : > { %p1101_p1 = scmp.eq.s32.totalorder %s744_s24, 0  ;;  %p746_p2 = scmp.ge.s32.totalorder %s1010_s23, 1 }
   0x7   : > { %p205_p3 = scmp.lt.s32.totalorder %s1010_s23, 3  ;;  %s1012_s28 = smov [#allocation5]  }
   0x8   : > { %s1306_s25 = scalar_select %p1101_p1, 1, 0 }
   0x9   : > { %p1109_p4 = por %p1101_p1, %p63_p0  ;;  %p1113_p5 = pnand %p746_p2, %p205_p3 }
   0xa   : > { %s220_s29 = sshll.u32 %s1012_s28, 4  ;;  %s39_s6 = sadd.s32 1, %s1006_s22  ;;  %s221_s29 = int_to_ptr.vmem [resolvable:$true] %s220_s29 }
   0xb   : > { %s1307_s26 = scalar_select %p1109_p4, 1, 0 }
   0xc   : > { %s1308_s27 = scalar_select %p1113_p5, 1, 0 }
   0xd   : > { %p809_p6 = pneg %p1113_p5  ;;  %s898_s9 = scalar_lea.hbm %s1297_s1, 256 }
   0xe   : > { %p899_p8 = scmp.ne.s32.totalorder %s1297_s1, %s898_s9  ;;  %p905_p12 = scmp.lt.u32.totalorder %s898_s9, %s1297_s1 }
   0xf   : > { %p1121_p7 = pnand %p809_p6, %p1101_p1 }
  0x11   : > { %p900_p9 = pneg %p1121_p7 }
  0x13   : > { %p901_p10 = pnand %p900_p9, %p899_p8 }
  0x15   : > { %p902_p11 = pneg %p901_p10 }
  0x17   : > { %p907_p13 = pnand %p905_p12, %p902_p11 }
  0x19   : > { %910 = shalt.err (!%p907_p13)
}
  0x1a   : > { %s911_s14 = scalar_lea.vmem %s221_s29, 256  ;;  %p919_p6 = scmp.lt.s32.totalorder %s221_s29, %s221_s29 }
  0x1b   : > { %p912_p0 = scmp.ne.s32.totalorder %s221_s29, %s911_s14  ;;  %p920_p1 = scmp.lt.s32.totalorder %s911_s14, %s911_s14 }
  0x1d   : > { %p914_p2 = pnand %p912_p0, %p900_p9  ;;  %p921_p4 = por %p920_p1, %p919_p6 }
  0x1f   : > { %p915_p3 = pneg %p914_p2 }
  0x21   : > { %p922_p5 = pnand %p921_p4, %p915_p3 }
  0x23   : > { %925 = shalt.err (!%p922_p5)
}
  0x24   : > { %s1013_s15 = smov 64   ;;  %s1014_s16 = smov 4  }
  0x25   : > { %812 = dma.hbm_to_vmem [thread:$0]  (!%p1121_p7), %s1297_s1, 256, %s221_s29, [#allocation6], %s1013_s15, %s1013_s15, %s1014_s16  }
  0x26   : > { %p41_p1 = scmp.ge.s32.totalorder %s39_s6, 2  ;;  %s50_s24 = sadd.s32 1, %s998_s20 }
  0x27   : > { %p57_p4 = scmp.ne.s32.totalorder %s998_s20, %s994_s19  ;;  %p58_p5 = scmp.eq.s32.totalorder %s1010_s23, 0 }
  0x28   : > { %s1320_s6 = smov (%p41_p1, %s39_s6), 0  ;;  %p818_p9 = scmp.lt.s32.totalorder %s1010_s23, 2 }
  0x29   : > { %p59_p8 = por %p58_p5, %p57_p4  ;;  %s43_s28 = ssub.s32 %s1006_s22, %s1320_s6 }
  0x2a   : > { %s237_s7 = sand.u32 1, %s998_s20   ;;  %p48_p10 = scmp.eq.s32.totalorder %s43_s28, 0 }
  0x2b   : > { %s749_s8 = sshll.u32 %s237_s7, 3  ;;  %s750_s9 = sshll.u32 %s1006_s22, 7 }
  0x2c   : > { %s1154_s10 = scalar_select %p48_p10, %s998_s20, %s50_s24  }
  0x2d   : > { %s1159_s29 = scalar_lea.hbm %s1296_s0, %s750_s9  ;;  %s241_s12 = scalar_lea.vmem [#allocation3], %s749_s8 }
  0x2e   : > { %s250_s13 = sshll.u32 %s241_s12, 4  ;;  %p1161_p7 = pnand %p818_p9, %p59_p8  ;;  %s1165_s13 = int_to_ptr.vmem [resolvable:$true] %s250_s13 }
  0x2f   : > { %s238_s15 = scalar_lea.sflag [#allocation4], %s237_s7  ;;  %s926_s16 = scalar_lea.hbm %s1159_s29, 128 }
  0x30   : > { %p927_p11 = scmp.ne.s32.totalorder %s1159_s29, %s926_s16  ;;  %p928_p12 = pneg %p1161_p7 }
  0x31   : > { %s931_s24 = scalar_lea.hbm %s1296_s0, 256  ;;  %p932_p2 = scmp.lt.u32.totalorder %s1159_s29, %s1296_s0 }
  0x32   : > { %p929_p13 = pnand %p928_p12, %p927_p11  ;;  %p933_p3 = scmp.lt.u32.totalorder %s931_s24, %s926_s16 }
  0x33   : > { %p935_p1 = scmp.lt.u32.totalorder %s926_s16, %s1159_s29 }
  0x34   : > { %p930_p0 = pneg %p929_p13  ;;  %p934_p6 = por %p933_p3, %p932_p2 }
  0x36   : > { %p936_p4 = por %p935_p1, %p934_p6 }
  0x38   : > { %p937_p5 = pnand %p936_p4, %p930_p0 }
  0x3a   : > { %940 = shalt.err (!%p937_p5)
}
  0x3b   : > { %s941_s7 = scalar_lea.vmem %s1165_s13, 128  ;;  %s1015_s9 = smov [#allocation3]  }
  0x3c   : > { %p942_p8 = scmp.ne.s32.totalorder %s1165_s13, %s941_s7  ;;  %s946_s30 = sshll.u32 %s1015_s9, 4  ;;  %s947_s30 = int_to_ptr.vmem [resolvable:$false] %s946_s30 }
  0x3d   : > { %s948_s11 = scalar_lea.vmem %s947_s30, 256  ;;  %p949_p11 = scmp.lt.s32.totalorder %s1165_s13, %s947_s30 }
  0x3e   : > { %p944_p9 = pnand %p942_p8, %p928_p12  ;;  %p950_p13 = scmp.lt.s32.totalorder %s948_s11, %s941_s7 }
  0x40   : > { %p945_p10 = pneg %p944_p9  ;;  %p951_p2 = por %p950_p13, %p949_p11 }
  0x42   : > { %p952_p3 = pnand %p951_p2, %p945_p10 }
  0x44   : > { %955 = shalt.err (!%p952_p3)
}
  0x45   : > { %816 = dma.hbm_to_vmem [thread:$0]  (!%p1161_p7), %s1159_s29, 128, %s1165_s13, %s238_s15  }
  0x46   : > { %p1311_p0 = scmp.ne.s32.totalorder %s1308_s27, 0 }
  0x47   : > { %s261_s12 = sand.u32 (!%p1311_p0), 1, %s994_s19   ;;  %p1312_p12 = scmp.ne.s32.totalorder (!%p1311_p0), %s1307_s26, 0 }
  0x48   : > { %259 = sbr.rel (%p1311_p0) target bundleno = 478 (0x1de), region = 32  ;;  %s752_s16 = sshll.u32 (!%p1311_p0), %s261_s12, 3 }
  0x49   : > { %s262_s17 = scalar_lea.sflag (!%p1311_p0), [#allocation4], %s261_s12  ;;  %s265_s18 = scalar_lea.vmem (!%p1311_p0), [#allocation3], %s752_s16 }
  0x4f   : > { %981 = dma.done.wait (%p1312_p12), %s262_s17, 128  }
  0x50   : > { %983 = vsyncadd (%p1312_p12), %s262_s17, 4294967168  ;;  %p1313_p6 = scmp.ne.s32.totalorder %s1306_s25, 0 }
  0x52   : > { %985 = dma.done.wait (%p1313_p6), [#allocation6], 256  }
  0x53   : > { %987 = vsyncadd (%p1313_p6), [#allocation6], 4294967040  ;;  %vm345_vm0 = vcmask 785408   ;;  %v1016_v0 = vmov 0.0   ;;  %vm1017_vm1 = vmmov 0   ;;  %v896_v1 = vld [vmem:[#allocation5] sm:$0xff]  }
  0x54   : > { %346 = vst.msk [vmem:[#allocation2] sm:$0xff] %vm345_vm0, %v1016_v0  ;;  %795 = vmatprep.subr.bf16.mxu0 %v1016_v0  ;;  %799 = vmatprep.mubr.msk.bf16.mxu0 %vm1017_vm1, %v1016_v0  ;;  %v897_v2 = vld [vmem:[#allocation5 + $0x8] sm:$0xff]   ;;  %v348_v3 = vld [vmem:[%s265_s18] sm:$0xff]  ;;  %vm366_vm2 = vcmask 261120   ;;  %p316_p7 = scmp.lt.s32.totalorder %s1002_s21, 1  ;;  %vm426_vm3 = vcmask 27648  }
  0x55   : > { %796 = vmatpush3.bf16.msra.mxu0 %v896_v1  ;;  %v349_v4 = vpack.c.bf16 %v348_v3, %v348_v3  ;;  %v763_v11 = vld [vmem:[%s1298_s2] ss:$0 sm:$0xff]  ;;  %s1018_s15 = smov 124   ;;  %s1019_s24 = smov 96  }
  0x56   : > { %797 = vmatprep.subr.bf16.mxu0 %v1016_v0  ;;  %s1322_s21 = smov (!%p316_p7, %s1002_s21), 1  ;;  %s1020_s28 = smov 92  }
  0x57   : > { %s1210_s27 = sshll.u32 %s1322_s21, 5  ;;  %s1021_s21 = smov 64  }
  0x58   : > { %s1216_s14 = scalar_lea.vmem %s1299_s3, %s1210_s27  ;;  %s1022_s8 = smov 120  }
  0x59   : > { %798 = vmatpush3.bf16.msra.mxu0 %v897_v2  ;;  %s1023_s7 = smov 60   ;;  %s1024_s9 = smov 56  }
  0x5a   : > { %s1025_s30 = smov 88   ;;  %s1026_s11 = smov 84  }
  0x5b   : > { %v347_v5 = vld [vmem:[#allocation2] sm:$0xff]  ;;  %s1027_s12 = smov 116   ;;  %s1028_s16 = smov 112  }
  0x5c   : > { %800 = vmatmul.mubr.msk.bf16.vlgmr.msra.gmra.mrb[0].mxu0 %vm366_vm2, %v349_v4  ;;  %s1029_s17 = smov 52   ;;  %s1030_s18 = smov 48  }
  0x5d   : > { %s1031_s25 = smov 80   ;;  %s1032_s26 = smov 76  }
  0x5e   : > { %s1033_s29 = smov 108   ;;  %s1034_s13 = smov 104  }
 0x12f   : > { %v404_v6 = vpop.f32.mrb[0].mxu0 }
 0x130   : > { %v410_v7 = vadd.f32 %v404_v6, %v347_v5  ;;  %v801_v8 = vpop.f32.mrb[1].mxu0 }
 0x131   : > { %v407_v9 = vpop.f32.mrb[2].mxu0 }
 0x132   : > { %412 = vst.msk [vmem:[#allocation2] sm:$0xff] %vm345_vm0, %v410_v7  ;;  %v802_v10 = vpop.f32.mrb[3].mxu0 }
 0x139   : > { %v416_v12 = vld [vmem:[#allocation2] sm:$0xff] }
 0x13a   : > { %v424_v13 = vadd.f32 %v763_v11, %v416_v12 }
 0x13c   : > { %v425_v14 = vpack.c.bf16 %v424_v13, %v424_v13 }
 0x13e   : > { %439 = vrot.lane.b32.xlu1 %v425_v14, %s1018_s15  ;;  %431 = vrot.lane.b32.xlu0 %v425_v14, %s1019_s24  ;;  %427 = vst.msk [vmem:[%s1216_s14] sm:$0xf] %vm426_vm3, %v425_v14  ;;  %s1035_s15 = smov 44   ;;  %s1036_s24 = smov 40  }
 0x142   : > { %444 = vrot.lane.b32.xlu1 %v425_v14, %s1020_s28  ;;  %435 = vrot.lane.b32.xlu0 %v425_v14, %s1021_s21  ;;  %s1037_s28 = smov 72   ;;  %s1038_s21 = smov 68  }
 0x146   : > { %454 = vrot.lane.b32.xlu1 %v425_v14, %s1022_s8  ;;  %449 = vrot.lane.b32.xlu0 %v425_v14, %s1023_s7  ;;  %s1039_s8 = smov 100   ;;  %s1040_s7 = smov 36  }
 0x14a   : > { %464 = vrot.lane.b32.xlu1 %v425_v14, %s1024_s9  ;;  %459 = vrot.lane.b32.xlu0 %v425_v14, %s1025_s30 }
 0x14e   : > { %474 = vrot.lane.b32.xlu1 %v425_v14, %s1026_s11  ;;  %469 = vrot.lane.b32.xlu0 %v425_v14, %s1027_s12  ;;  %s1224_s11 = scalar_lea.vmem %s1300_s4, %s1210_s27 }
 0x152   : > { %484 = vrot.lane.b32.xlu1 %v425_v14, %s1028_s16  ;;  %479 = vrot.lane.b32.xlu0 %v425_v14, %s1029_s17  ;;  %s1234_s17 = scalar_lea.vmem %s1301_s5, %s1210_s27 }
 0x156   : > { %494 = vrot.lane.b32.xlu1 %v425_v14, %s1030_s18  ;;  %489 = vrot.lane.b32.xlu0 %v425_v14, %s1031_s25 }
 0x15a   : > { %504 = vrot.lane.b32.xlu1 %v425_v14, %s1032_s26  ;;  %499 = vrot.lane.b32.xlu0 %v425_v14, %s1033_s29 }
 0x15e   : > { %514 = vrot.lane.b32.xlu1 %v425_v14, %s1034_s13  ;;  %509 = vrot.lane.b32.xlu0 %v425_v14, %s1035_s15 }
 0x162   : > { %524 = vrot.lane.b32.xlu1 %v425_v14, %s1036_s24  ;;  %519 = vrot.lane.b32.xlu0 %v425_v14, %s1037_s28 }
 0x166   : > { %534 = vrot.lane.b32.xlu1 %v425_v14, %s1038_s21  ;;  %529 = vrot.lane.b32.xlu0 %v425_v14, %s1039_s8 }
 0x16a   : > { %539 = vrot.lane.b32.xlu0 %v425_v14, %s1040_s7 }
 0x1b0   : > { %v440_v15 = vpop.permute.xlu1 %439  ;;  %v432_v16 = vpop.permute.xlu0 %431 }
 0x1b1   : > { %765 = vst.msk [vmem:[%s1216_s14 + $0x4] sm:$0xf] %vm426_vm3, %v440_v15  ;;  %434 = vst.msk [vmem:[%s1224_s11] sm:$0xf] %vm426_vm3, %v432_v16 }
 0x1b4   : > { %v445_v17 = vpop.permute.xlu1 %444  ;;  %v436_v18 = vpop.permute.xlu0 %435 }
 0x1b5   : > { %766 = vst.msk [vmem:[%s1224_s11 + $0x4] sm:$0xf] %vm426_vm3, %v445_v17  ;;  %438 = vst.msk [vmem:[%s1234_s17] sm:$0xf] %vm426_vm3, %v436_v18 }
 0x1b8   : > { %v455_v19 = vpop.permute.xlu1 %454  ;;  %v450_v20 = vpop.permute.xlu0 %449 }
 0x1b9   : > { %768 = vst.msk [vmem:[%s1216_s14 + $0x8] sm:$0xf] %vm426_vm3, %v455_v19  ;;  %767 = vst.msk [vmem:[%s1234_s17 + $0x4] sm:$0xf] %vm426_vm3, %v450_v20 }
 0x1bc   : > { %v465_v21 = vpop.permute.xlu1 %464  ;;  %v460_v22 = vpop.permute.xlu0 %459 }
 0x1bd   : > { %770 = vst.msk [vmem:[%s1234_s17 + $0x8] sm:$0xf] %vm426_vm3, %v465_v21  ;;  %769 = vst.msk [vmem:[%s1224_s11 + $0x8] sm:$0xf] %vm426_vm3, %v460_v22 }
 0x1c0   : > { %v475_v23 = vpop.permute.xlu1 %474  ;;  %v470_v24 = vpop.permute.xlu0 %469 }
 0x1c1   : > { %772 = vst.msk [vmem:[%s1224_s11 + $0xc] sm:$0xf] %vm426_vm3, %v475_v23  ;;  %771 = vst.msk [vmem:[%s1216_s14 + $0xc] sm:$0xf] %vm426_vm3, %v470_v24 }
 0x1c4   : > { %v485_v25 = vpop.permute.xlu1 %484  ;;  %v480_v26 = vpop.permute.xlu0 %479 }
 0x1c5   : > { %774 = vst.msk [vmem:[%s1216_s14 + $0x10] sm:$0xf] %vm426_vm3, %v485_v25  ;;  %773 = vst.msk [vmem:[%s1234_s17 + $0xc] sm:$0xf] %vm426_vm3, %v480_v26 }
 0x1c8   : > { %v495_v27 = vpop.permute.xlu1 %494  ;;  %v490_v28 = vpop.permute.xlu0 %489 }
 0x1c9   : > { %776 = vst.msk [vmem:[%s1234_s17 + $0x10] sm:$0xf] %vm426_vm3, %v495_v27  ;;  %775 = vst.msk [vmem:[%s1224_s11 + $0x10] sm:$0xf] %vm426_vm3, %v490_v28 }
 0x1cc   : > { %v505_v29 = vpop.permute.xlu1 %504  ;;  %v500_v30 = vpop.permute.xlu0 %499 }
 0x1cd   : > { %778 = vst.msk [vmem:[%s1224_s11 + $0x14] sm:$0xf] %vm426_vm3, %v505_v29  ;;  %777 = vst.msk [vmem:[%s1216_s14 + $0x14] sm:$0xf] %vm426_vm3, %v500_v30 }
 0x1d0   : > { %v515_v31 = vpop.permute.xlu1 %514  ;;  %v510_v32 = vpop.permute.xlu0 %509 }
 0x1d1   : > { %780 = vst.msk [vmem:[%s1216_s14 + $0x18] sm:$0xf] %vm426_vm3, %v515_v31  ;;  %779 = vst.msk [vmem:[%s1234_s17 + $0x14] sm:$0xf] %vm426_vm3, %v510_v32 }
 0x1d4   : > { %v525_v33 = vpop.permute.xlu1 %524  ;;  %v520_v34 = vpop.permute.xlu0 %519 }
 0x1d5   : > { %782 = vst.msk [vmem:[%s1234_s17 + $0x18] sm:$0xf] %vm426_vm3, %v525_v33  ;;  %781 = vst.msk [vmem:[%s1224_s11 + $0x18] sm:$0xf] %vm426_vm3, %v520_v34 }
 0x1d8   : > { %v535_v35 = vpop.permute.xlu1 %534  ;;  %v530_v36 = vpop.permute.xlu0 %529 }
 0x1d9   : > { %784 = vst.msk [vmem:[%s1224_s11 + $0x1c] sm:$0xf] %vm426_vm3, %v535_v35  ;;  %783 = vst.msk [vmem:[%s1216_s14 + $0x1c] sm:$0xf] %vm426_vm3, %v530_v36 }
 0x1dc   : > { %v540_v37 = vpop.permute.xlu0 %539 }
 0x1dd   : > { %785 = vst.msk [vmem:[%s1234_s17 + $0x1c] sm:$0xf] %vm426_vm3, %v540_v37 }
 0x1de PF: > { %s20_s23 = sadd.s32 1, %s1010_s23   ;;  %s1314_s18 = smov %s994_s19 }
 0x1df   : > { %p17_p1 = scmp.ge.s32.totalorder %s20_s23, 4   ;;  %s1315_s19 = smov %s998_s20 }
 0x1e0   : > { %s1316_s20 = smov %s1154_s10  ;;  %s1317_s21 = smov %s1006_s22 }
 0x1e1   : > { %s1318_s22 = smov %s1320_s6  ;;  %19 = sbr.rel (!%p17_p1) target bundleno = 5 (0x5), region = 130 }
 0x1e8   :  { %615 = vsyncpa [#allocation4], 1 }
 0x1e9   :  { %617 = vsyncpa [#allocation4 + $0x1], 1 }
 0x1ea   :  { %618 = vsyncpa [#allocation6], 1 }

</bundles_post_ra>
